<compile_context>
chip_gen: v6e
topology: v6e:2x2x1
jax: 0.10.0
libtpu: 0.0.40
codegen_flags: <defaults>
</compile_context>

<pallas_src>
import jax
import jax.numpy as jnp
from jax.experimental import pallas as pl
from jax.experimental.pallas import tpu as pltpu

LANE = 128
NEG_MASK = -1e9  # bias for padded action lanes -> exp() underflows to 0


def _round_up(x, m):
    return ((x + m - 1) // m) * m


# ----------------------------- kernel ---------------------------------------
def make_actor_kernel(action_dim):
    def actor_kernel(x_ref, w1_ref, b1_ref, w2_ref, b2m_ref, o_ref):
        # x_ref  : (TB, state_dim)
        # w1_ref : (state_dim, hidden)   b1_ref : (1, hidden)
        # w2_ref : (hidden, LANE)        zero-padded columns past action_dim
        # b2m_ref: (1, LANE)             [b2, NEG_MASK, ...]
        # o_ref  : (TB, action_dim)
        x = x_ref[...]
        h = jnp.dot(x, w1_ref[...], preferred_element_type=jnp.float32)
        h = jnp.maximum(h + b1_ref[...], 0.0)
        logits = jnp.dot(h, w2_ref[...], preferred_element_type=jnp.float32)
        logits = logits + b2m_ref[...]
        # numerically stable softmax over the lane-dense, masked action axis
        m = jnp.max(logits, axis=-1, keepdims=True)
        e = jnp.exp(logits - m)
        probs = e / jnp.sum(e, axis=-1, keepdims=True)
        # store only the real action lanes (small masked store)
        o_ref[...] = probs[:, :action_dim].astype(o_ref.dtype)

    return actor_kernel


# ----------------------------- packing ---------------------------------------
def pack_actor_params(w1, b1, w2, b2):
    """Lane-pad w2 and build the [b2, -1e9, ...] bias/mask row; hid stays 128."""
    hidden, action_dim = w2.shape
    out_pad = _round_up(action_dim, LANE)  # 128 for action_dim=2
    w2_pad = jnp.zeros((hidden, out_pad), jnp.float32).at[:, :action_dim].set(
        w2.astype(jnp.float32))
    b2m = jnp.full((1, out_pad), NEG_MASK, jnp.float32).at[0, :action_dim].set(
        b2.astype(jnp.float32))
    return (w1.astype(jnp.float32),
            b1.reshape(1, hidden).astype(jnp.float32),
            w2_pad, b2m)


# ----------------------------- wrapper ---------------------------------------
def actor_forward(state, packed, action_dim, *, tb=256):
    w1, b1_row, w2_pad, b2m = packed
    B, state_dim = state.shape
    _, hidden = w1.shape
    _, out_pad = w2_pad.shape

    x = state.astype(jnp.float32)
    b_pad = _round_up(B, tb)
    if b_pad != B:  # generality only; pick B % tb == 0 to skip this pass
        x = jnp.pad(x, ((0, b_pad - B), (0, 0)))

    grid = (b_pad // tb,)
    cost = pl.CostEstimate(
        flops=int(2 * b_pad * (state_dim * hidden + hidden * out_pad)
                  + 4 * b_pad * out_pad),
        transcendentals=int(b_pad * out_pad),
        bytes_accessed=int(4 * (b_pad * state_dim + w1.size + b1_row.size
                                + w2_pad.size + b2m.size
                                + b_pad * action_dim)),
    )

    probs = pl.pallas_call(
        make_actor_kernel(action_dim),
        out_shape=jax.ShapeDtypeStruct((b_pad, action_dim), jnp.float32),
        grid=grid,
        in_specs=[
            pl.BlockSpec((tb, state_dim), lambda i: (i, 0)),       # batch tile
            pl.BlockSpec((state_dim, hidden), lambda i: (0, 0)),   # resident w1
            pl.BlockSpec((1, hidden), lambda i: (0, 0)),           # resident b1
            pl.BlockSpec((hidden, out_pad), lambda i: (0, 0)),     # resident w2
            pl.BlockSpec((1, out_pad), lambda i: (0, 0)),          # b2 + mask
        ],
        out_specs=pl.BlockSpec((tb, action_dim), lambda i: (i, 0)),
        compiler_params=pltpu.CompilerParams(
            dimension_semantics=("parallel",)),
        cost_estimate=cost,
    )(x, w1, b1_row, w2_pad, b2m)

    return probs if b_pad == B else probs[:B]


# ----------------------------- init / reference ------------------------------
def init_actor_params(key, state_dim, action_dim, hidden=128):
    # PyTorch nn.Linear default init: U(-1/sqrt(fan_in), 1/sqrt(fan_in))
    k1, k2, k3, k4 = jax.random.split(key, 4)
    lim1 = 1.0 / jnp.sqrt(jnp.float32(state_dim))
    lim2 = 1.0 / jnp.sqrt(jnp.float32(hidden))
    w1 = jax.random.uniform(k1, (state_dim, hidden), jnp.float32, -lim1, lim1)
    b1 = jax.random.uniform(k2, (hidden,), jnp.float32, -lim1, lim1)
    w2 = jax.random.uniform(k3, (hidden, action_dim), jnp.float32, -lim2, lim2)
    b2 = jax.random.uniform(k4, (action_dim,), jnp.float32, -lim2, lim2)
    return w1, b1, w2, b2


def actor_reference(state, w1, b1, w2, b2):
    h = jnp.maximum(state @ w1 + b1, 0.0)
    return jax.nn.softmax(h @ w2 + b2, axis=-1)


# ----------------------------- main -------------------------------------------
if __name__ == "__main__":
    # CartPole-v1: state_dim = 4, action_dim = 2
    state_dim, action_dim, hidden = 4, 2, 128
    batch = 512   # multiple of tb -> no batch padding pass
    tb = 256      # grid=(2,): feeds both v7x TCs, only 2 steps on v5e/v6e

    key = jax.random.PRNGKey(0)
    kp, kx = jax.random.split(key)
    w1, b1, w2, b2 = init_actor_params(kp, state_dim, action_dim, hidden)
    state = jax.random.normal(kx, (batch, state_dim), jnp.float32)

    packed = pack_actor_params(w1, b1, w2, b2)
    probs = actor_forward(state, packed, action_dim, tb=tb)
    probs = jax.block_until_ready(probs)

    # correctness checks against a pure-JAX reference
    ref = actor_reference(state, w1, b1, w2, b2)
    assert probs.shape == (batch, action_dim)
    assert bool(jnp.allclose(jnp.sum(probs, axis=-1), 1.0, atol=1e-5))
    assert bool(jnp.allclose(probs, ref, atol=1e-5, rtol=1e-5))
    print("KERNEL_OK")
</pallas_src>

<mosaic_0001>
module attributes {stable_mosaic.version = 11 : i64} {
  func.func @actor_kernel(%arg0: i32, %arg1: memref<256x4xf32, #tpu.memory_space<vmem>>, %arg2: memref<4x128xf32, #tpu.memory_space<vmem>>, %arg3: memref<1x128xf32, #tpu.memory_space<vmem>>, %arg4: memref<128x128xf32, #tpu.memory_space<vmem>>, %arg5: memref<1x128xf32, #tpu.memory_space<vmem>>, %arg6: memref<256x2xf32, #tpu.memory_space<vmem>>) attributes {dimension_semantics = [#tpu.dimension_semantics<parallel>], iteration_bounds = array<i64: 2>, scalar_prefetch = 0 : i64, scratch_operands = 0 : i64, tpu.core_type = #tpu.core_type<tc>, window_params = [{transform_indices = @transform_0, window_bounds = array<i64: 256, 4>}, {pipeline_mode = #tpu.pipeline_mode<synchronous>, transform_indices = @transform_1, window_bounds = array<i64: 4, 128>}, {pipeline_mode = #tpu.pipeline_mode<synchronous>, transform_indices = @transform_2, window_bounds = array<i64: 1, 128>}, {pipeline_mode = #tpu.pipeline_mode<synchronous>, transform_indices = @transform_3, window_bounds = array<i64: 128, 128>}, {pipeline_mode = #tpu.pipeline_mode<synchronous>, transform_indices = @transform_4, window_bounds = array<i64: 1, 128>}, {transform_indices = @transform_5, window_bounds = array<i64: 256, 2>}]} {
    %c0 = arith.constant 0 : index
    %c0_0 = arith.constant 0 : index
    %0 = vector.load %arg1[%c0, %c0_0] : memref<256x4xf32, #tpu.memory_space<vmem>>, vector<256x4xf32>
    %c0_1 = arith.constant 0 : index
    %c0_2 = arith.constant 0 : index
    %1 = vector.load %arg2[%c0_1, %c0_2] : memref<4x128xf32, #tpu.memory_space<vmem>>, vector<4x128xf32>
    %cst = arith.constant dense<0.000000e+00> : vector<256x128xf32>
    %2 = tpu.matmul %0, %1, %cst {dimension_numbers = #tpu.dot_dimension_numbers<[1], [0], [0], [1], [0, 0, 1, 1], [], []>} : vector<256x4xf32>, vector<4x128xf32>, vector<256x128xf32> -> vector<256x128xf32>
    %c0_3 = arith.constant 0 : index
    %c0_4 = arith.constant 0 : index
    %3 = vector.load %arg3[%c0_3, %c0_4] : memref<1x128xf32, #tpu.memory_space<vmem>>, vector<1x128xf32>
    %4 = vector.broadcast %3 : vector<1x128xf32> to vector<256x128xf32>
    %5 = arith.addf %2, %4 : vector<256x128xf32>
    %cst_5 = arith.constant 0.000000e+00 : f32
    %6 = vector.broadcast %cst_5 : f32 to vector<256x128xf32>
    %7 = arith.maximumf %5, %6 : vector<256x128xf32>
    %c0_6 = arith.constant 0 : index
    %c0_7 = arith.constant 0 : index
    %8 = vector.load %arg4[%c0_6, %c0_7] : memref<128x128xf32, #tpu.memory_space<vmem>>, vector<128x128xf32>
    %cst_8 = arith.constant dense<0.000000e+00> : vector<256x128xf32>
    %9 = tpu.matmul %7, %8, %cst_8 {dimension_numbers = #tpu.dot_dimension_numbers<[1], [0], [0], [1], [0, 0, 1, 1], [], []>} : vector<256x128xf32>, vector<128x128xf32>, vector<256x128xf32> -> vector<256x128xf32>
    %c0_9 = arith.constant 0 : index
    %c0_10 = arith.constant 0 : index
    %10 = vector.load %arg5[%c0_9, %c0_10] : memref<1x128xf32, #tpu.memory_space<vmem>>, vector<1x128xf32>
    %11 = vector.broadcast %10 : vector<1x128xf32> to vector<256x128xf32>
    %12 = arith.addf %9, %11 : vector<256x128xf32>
    %cst_11 = arith.constant dense<0xFF800000> : vector<256xf32>
    %13 = vector.multi_reduction <maximumf>, %12, %cst_11 [1] : vector<256x128xf32> to vector<256xf32>
    %14 = vector.shape_cast %13 : vector<256xf32> to vector<256x1xf32>
    %15 = vector.broadcast %14 : vector<256x1xf32> to vector<256x128xf32>
    %16 = arith.subf %12, %15 : vector<256x128xf32>
    %17 = math.exp %16 : vector<256x128xf32>
    %cst_12 = arith.constant dense<0.000000e+00> : vector<256xf32>
    %18 = vector.multi_reduction <add>, %17, %cst_12 [1] : vector<256x128xf32> to vector<256xf32>
    %19 = vector.shape_cast %18 : vector<256xf32> to vector<256x1xf32>
    %20 = vector.broadcast %19 : vector<256x1xf32> to vector<256x128xf32>
    %21 = arith.divf %17, %20 : vector<256x128xf32>
    %22 = vector.extract_strided_slice %21 {offsets = [0, 0], sizes = [256, 2], strides = [1, 1]} : vector<256x128xf32> to vector<256x2xf32>
    %c0_13 = arith.constant 0 : index
    %c0_14 = arith.constant 0 : index
    %23 = vector.load %arg6[%c0_13, %c0_14] : memref<256x2xf32, #tpu.memory_space<vmem>>, vector<256x2xf32>
    tpu.vector_store %arg6[%c0_13, %c0_14], %22 {strides = array<i32>} : memref<256x2xf32, #tpu.memory_space<vmem>>, vector<256x2xf32>,
    return
  }
  func.func @transform_0(%arg0: i32) -> (i32, i32) {
    %c0_i32 = arith.constant 0 : i32
    %c0_i32_0 = arith.constant 0 : i32
    return %arg0, %c0_i32 : i32, i32
  }
  func.func @transform_1(%arg0: i32) -> (i32, i32) {
    %c0_i32 = arith.constant 0 : i32
    %c0_i32_0 = arith.constant 0 : i32
    %c0_i32_1 = arith.constant 0 : i32
    return %c0_i32, %c0_i32_0 : i32, i32
  }
  func.func @transform_2(%arg0: i32) -> (i32, i32) {
    %c0_i32 = arith.constant 0 : i32
    %c0_i32_0 = arith.constant 0 : i32
    %c0_i32_1 = arith.constant 0 : i32
    return %c0_i32, %c0_i32_0 : i32, i32
  }
  func.func @transform_3(%arg0: i32) -> (i32, i32) {
    %c0_i32 = arith.constant 0 : i32
    %c0_i32_0 = arith.constant 0 : i32
    %c0_i32_1 = arith.constant 0 : i32
    return %c0_i32, %c0_i32_0 : i32, i32
  }
  func.func @transform_4(%arg0: i32) -> (i32, i32) {
    %c0_i32 = arith.constant 0 : i32
    %c0_i32_0 = arith.constant 0 : i32
    %c0_i32_1 = arith.constant 0 : i32
    return %c0_i32, %c0_i32_0 : i32, i32
  }
  func.func @transform_5(%arg0: i32) -> (i32, i32) {
    %c0_i32 = arith.constant 0 : i32
    %c0_i32_0 = arith.constant 0 : i32
    return %arg0, %c0_i32 : i32, i32
  }
}

</mosaic_0001>

<bundles_post_ra>
// kernel: tpu_custom_call.1
= control target key start
LH: loop header
LB: loop body
LE: loop exit
PB: predicated region body
PF: predicated region fallthrough
CT: control target
= control target key end

     0   :  { %s1714_s18 = smov 0   ;;  %s2251_s0 = inlined_call_operand.vmem [shape: f32[512,4], index: 0, kind: input, shape index: {}]   ;;  %s2252_s1 = inlined_call_operand.vmem [shape: f32[4,128], index: 1, kind: input, shape index: {}]   ;;  %s2253_s2 = inlined_call_operand.vmem [shape: f32[1,128], index: 2, kind: input, shape index: {}]   ;;  %s2254_s3 = inlined_call_operand.vmem [shape: f32[128,128], index: 3, kind: input, shape index: {}]   ;;  %s2255_s4 = inlined_call_operand.vmem [shape: f32[1,128], index: 4, kind: input, shape index: {}]   ;;  %s2256_s5 = inlined_call_operand.vmem [shape: f32[512,2], index: 5, kind: output, shape index: {}]  }
   0x1 LB: > { %s1251_s19 = sadd.s32 4294967295, %s1682_s18   ;;  %p1255_p0 = scmp.ge.s32.totalorder %s1682_s18, 1  ;;  %s1682_s18 = sphi %s1714_s18, %s15_s18  }
   0x2   : > { %p188_p1 = scmp.lt.s32.totalorder %s1682_s18, 3 }
   0x4   : > { %p189_p2 = pnand %p1255_p0, %p188_p1 }
   0x5   : > { %s1256_s22 = sshll.u32 (!%p189_p2), %s1251_s19, 5 }
   0x6   : > { %192 = sbr.rel (%p189_p2) target bundleno = 788 (0x314), region = 40  ;;  %p217_p3 = scmp.lt.s32.totalorder (!%p189_p2), %s1256_s22, 63 }
   0xb   : > { %v260_v0 = vld [vmem:[%s2252_s1] sm:$0xf]  ;;  %vm365_vm0 = vcmask 1043456   ;;  %v641_v1 = vld [vmem:[%s2254_s3 + $0x78] sm:$0xff]  ;;  %v640_v2 = vld [vmem:[%s2254_s3 + $0x70] sm:$0xff]  ;;  %s2258_s22 = smov (!%p217_p3, %s1256_s22), 63 }
   0xc   : > { %1378 = vmatprep.subr.msk.mxu0 %vm365_vm0, %v260_v0  ;;  %1508 = vmatprep.subr.mxu1 %v641_v1  ;;  %v639_v3 = vld [vmem:[%s2254_s3 + $0x68] sm:$0xff]  ;;  %s1257_s29 = sshll.u32 %s2258_s22, 3  ;;  %vm268_vm1 = vcmask 31744   ;;  %v638_v4 = vld [vmem:[%s2254_s3 + $0x60] sm:$0xff]  ;;  %v637_v8 = vld [vmem:[%s2254_s3 + $0x58] sm:$0xff]  ;;  %vm1162_vm2 = vcmask 15360  }
   0xd   : > { %1379 = vmatpush3.msk.msra.mxu0 %vm365_vm0, %v260_v0  ;;  %1524 = vmatpush3.msra.mxu1 %v641_v1  ;;  %s1742_s7 = scalar_lea.vmem %s2251_s0, %s1257_s29  ;;  %v636_v11 = vld [vmem:[%s2254_s3 + $0x50] sm:$0xff]  ;;  %v635_v14 = vld [vmem:[%s2254_s3 + $0x48] sm:$0xff]  ;;  %v634_v17 = vld [vmem:[%s2254_s3 + $0x40] sm:$0xff]  ;;  %s2150_s19 = scalar_lea.vmem %s2256_s5, %s1257_s29 }
   0xe   : > { %1428 = vmatprep.subr.mxu0 %v641_v1  ;;  %1509 = vmatprep.subr.mxu1 %v640_v2  ;;  %v228_v5 = vld [vmem:[%s1742_s7] sm:$0xff]  ;;  %v229_v6 = vld [vmem:[%s1742_s7 + $0x8] sm:$0xff]  ;;  %v230_v7 = vld [vmem:[%s1742_s7 + $0x10] sm:$0xff] }
   0xf   : > { %1525 = vmatpush3.msra.mxu1 %v640_v2  ;;  %1380 = vmatprep.mubr.msk.f32.mxu0 %vm268_vm1, %v228_v5  ;;  %v231_v9 = vld [vmem:[%s1742_s7 + $0x18] sm:$0xff]  ;;  %v232_v10 = vld [vmem:[%s1742_s7 + $0x20] sm:$0xff]  ;;  %v233_v12 = vld [vmem:[%s1742_s7 + $0x28] sm:$0xff] }
  0x10   : > { %1510 = vmatprep.subr.mxu1 %v639_v3  ;;  %1381 = vmatmul.mubr.msk.f32.vlgmr.msra.gmra.mxu0 %vm268_vm1, %v229_v6  ;;  %v234_v13 = vld [vmem:[%s1742_s7 + $0x30] sm:$0xff]  ;;  %v235_v15 = vld [vmem:[%s1742_s7 + $0x38] sm:$0xff]  ;;  %v236_v16 = vld [vmem:[%s1742_s7 + $0x40] sm:$0xff] }
  0x11   : > { %1526 = vmatpush3.msra.mxu1 %v639_v3  ;;  %1383 = vmatprep.mubr.msk.f32.mxu0 %vm268_vm1, %v230_v7  ;;  %v237_v18 = vld [vmem:[%s1742_s7 + $0x48] sm:$0xff]  ;;  %v633_v19 = vld [vmem:[%s2254_s3 + $0x38] sm:$0xff]  ;;  %v238_v20 = vld [vmem:[%s1742_s7 + $0x50] sm:$0xff] }
  0x12   : > { %1511 = vmatprep.subr.mxu1 %v638_v4  ;;  %1429 = vmatpush3.msra.mxu0 %v641_v1  ;;  %v632_v21 = vld [vmem:[%s2254_s3 + $0x30] sm:$0xff]  ;;  %v239_v22 = vld [vmem:[%s1742_s7 + $0x58] sm:$0xff]  ;;  %v631_v23 = vld [vmem:[%s2254_s3 + $0x28] sm:$0xff] }
  0x13   : > { %1527 = vmatpush3.msra.mxu1 %v638_v4  ;;  %1430 = vmatprep.subr.mxu0 %v640_v2  ;;  %v240_v24 = vld [vmem:[%s1742_s7 + $0x60] sm:$0xff]  ;;  %v241_v26 = vld [vmem:[%s1742_s7 + $0x68] sm:$0xff]  ;;  %v629_v27 = vld [vmem:[%s2254_s3 + $0x18] sm:$0xff] }
  0x14   : > { %1512 = vmatprep.subr.mxu1 %v637_v8  ;;  %1431 = vmatpush3.msra.mxu0 %v640_v2  ;;  %v630_v25 = vld [vmem:[%s2254_s3 + $0x20] sm:$0xff]  ;;  %v242_v28 = vld [vmem:[%s1742_s7 + $0x70] sm:$0xff]  ;;  %v243_v30 = vld [vmem:[%s1742_s7 + $0x78] sm:$0xff] }
  0x15   : > { %1528 = vmatpush3.msra.mxu1 %v637_v8  ;;  %1384 = vmatmul.mubr.msk.f32.gmra.mxu0 %vm268_vm1, %v231_v9  ;;  %v628_v29 = vld [vmem:[%s2254_s3 + $0x10] sm:$0xff]  ;;  %v627_v31 = vld [vmem:[%s2254_s3 + $0x8] sm:$0xff]  ;;  %v244_v32 = vld [vmem:[%s1742_s7 + $0x80] sm:$0xff] }
  0x16   : > { %1513 = vmatprep.subr.mxu1 %v636_v11  ;;  %1432 = vmatprep.subr.mxu0 %v639_v3  ;;  %v245_v33 = vld [vmem:[%s1742_s7 + $0x88] sm:$0xff]  ;;  %v246_v34 = vld [vmem:[%s1742_s7 + $0x90] sm:$0xff]  ;;  %v247_v35 = vld [vmem:[%s1742_s7 + $0x98] sm:$0xff] }
  0x17   : > { %1386 = vmatprep.mubr.msk.f32.mxu0 %vm268_vm1, %v232_v10  ;;  %1433 = vmatpush3.msra.mxu0 %v639_v3  ;;  %v248_v36 = vld [vmem:[%s1742_s7 + $0xa0] sm:$0xff]  ;;  %v249_v37 = vld [vmem:[%s1742_s7 + $0xa8] sm:$0xff]  ;;  %v250_v38 = vld [vmem:[%s1742_s7 + $0xb0] sm:$0xff] }
  0x18   : > { %1434 = vmatprep.subr.mxu0 %v638_v4  ;;  %1529 = vmatpush3.msra.mxu1 %v636_v11  ;;  %v251_v39 = vld [vmem:[%s1742_s7 + $0xb8] sm:$0xff]  ;;  %v252_v40 = vld [vmem:[%s1742_s7 + $0xc0] sm:$0xff]  ;;  %v253_v41 = vld [vmem:[%s1742_s7 + $0xc8] sm:$0xff] }
  0x19   : > { %1435 = vmatpush3.msra.mxu0 %v638_v4  ;;  %1514 = vmatprep.subr.mxu1 %v635_v14  ;;  %v254_v42 = vld [vmem:[%s1742_s7 + $0xd0] sm:$0xff]  ;;  %v255_v43 = vld [vmem:[%s1742_s7 + $0xd8] sm:$0xff]  ;;  %v256_v44 = vld [vmem:[%s1742_s7 + $0xe0] sm:$0xff] }
  0x1a   : > { %1387 = vmatmul.mubr.msk.f32.gmra.mxu0 %vm268_vm1, %v233_v12  ;;  %1436 = vmatprep.subr.mxu0 %v637_v8  ;;  %v257_v45 = vld [vmem:[%s1742_s7 + $0xe8] sm:$0xff]  ;;  %v258_v46 = vld [vmem:[%s1742_s7 + $0xf0] sm:$0xff]  ;;  %v259_v47 = vld [vmem:[%s1742_s7 + $0xf8] sm:$0xff] }
  0x1b   : > { %1389 = vmatprep.mubr.msk.f32.mxu0 %vm268_vm1, %v234_v13  ;;  %1437 = vmatpush3.msra.mxu0 %v637_v8  ;;  %v626_v48 = vld [vmem:[%s2254_s3] sm:$0xff] }
  0x1c   : > { %1438 = vmatprep.subr.mxu0 %v636_v11  ;;  %1530 = vmatpush3.msra.mxu1 %v635_v14  ;;  %v1850_v49 = vld [vmem:[%s2253_s2] ss:$0 sm:$0xff] }
  0x1d   : > { %1439 = vmatpush3.msra.mxu0 %v636_v11  ;;  %1515 = vmatprep.subr.mxu1 %v634_v17 }
  0x1e   : > { %1390 = vmatmul.mubr.msk.f32.gmra.mxu0 %vm268_vm1, %v235_v15  ;;  %1440 = vmatprep.subr.mxu0 %v635_v14 }
  0x1f   : > { %1392 = vmatprep.mubr.msk.f32.mxu0 %vm268_vm1, %v236_v16  ;;  %1441 = vmatpush3.msra.mxu0 %v635_v14 }
  0x20   : > { %1442 = vmatprep.subr.mxu0 %v634_v17  ;;  %1531 = vmatpush3.msra.mxu1 %v634_v17 }
  0x21   : > { %1443 = vmatpush3.msra.mxu0 %v634_v17  ;;  %1516 = vmatprep.subr.mxu1 %v633_v19 }
  0x22   : > { %1393 = vmatmul.mubr.msk.f32.gmra.mxu0 %vm268_vm1, %v237_v18  ;;  %1444 = vmatprep.subr.mxu0 %v633_v19 }
  0x23   : > { %1395 = vmatprep.mubr.msk.f32.mxu0 %vm268_vm1, %v238_v20  ;;  %1445 = vmatpush3.msra.mxu0 %v633_v19 }
  0x24   : > { %1446 = vmatprep.subr.mxu0 %v632_v21  ;;  %1532 = vmatpush3.msra.mxu1 %v633_v19 }
  0x25   : > { %1447 = vmatpush3.msra.mxu0 %v632_v21  ;;  %1517 = vmatprep.subr.mxu1 %v632_v21 }
  0x26   : > { %1396 = vmatmul.mubr.msk.f32.gmra.mxu0 %vm268_vm1, %v239_v22  ;;  %1448 = vmatprep.subr.mxu0 %v631_v23 }
  0x27   : > { %1398 = vmatprep.mubr.msk.f32.mxu0 %vm268_vm1, %v240_v24  ;;  %1449 = vmatpush3.msra.mxu0 %v631_v23 }
  0x28   : > { %1450 = vmatprep.subr.mxu0 %v630_v25  ;;  %1533 = vmatpush3.msra.mxu1 %v632_v21 }
  0x29   : > { %1451 = vmatpush3.msra.mxu0 %v630_v25  ;;  %1518 = vmatprep.subr.mxu1 %v631_v23 }
  0x2a   : > { %1399 = vmatmul.mubr.msk.f32.gmra.mxu0 %vm268_vm1, %v241_v26  ;;  %1452 = vmatprep.subr.mxu0 %v629_v27 }
  0x2b   : > { %1401 = vmatprep.mubr.msk.f32.mxu0 %vm268_vm1, %v242_v28  ;;  %1453 = vmatpush3.msra.mxu0 %v629_v27 }
  0x2c   : > { %1454 = vmatprep.subr.mxu0 %v628_v29  ;;  %1534 = vmatpush3.msra.mxu1 %v631_v23 }
  0x2d   : > { %1455 = vmatpush3.msra.mxu0 %v628_v29  ;;  %1519 = vmatprep.subr.mxu1 %v630_v25 }
  0x2e   : > { %1402 = vmatmul.mubr.msk.f32.gmra.mxu0 %vm268_vm1, %v243_v30  ;;  %1456 = vmatprep.subr.mxu0 %v627_v31 }
  0x2f   : > { %1404 = vmatprep.mubr.msk.f32.mxu0 %vm268_vm1, %v244_v32  ;;  %1457 = vmatpush3.msra.mxu0 %v627_v31 }
  0x30   : > { %1535 = vmatpush3.msra.mxu1 %v630_v25  ;;  %1458 = vmatprep.subr.mxu0 %v626_v48 }
  0x31   : > { %1520 = vmatprep.subr.mxu1 %v629_v27  ;;  %1459 = vmatpush3.msra.mxu0 %v626_v48 }
  0x32   : > { %1405 = vmatmul.mubr.msk.f32.gmra.mxu0 %vm268_vm1, %v245_v33  ;;  %1536 = vmatpush3.msra.mxu1 %v629_v27 }
  0x33   : > { %1407 = vmatprep.mubr.msk.f32.mxu0 %vm268_vm1, %v246_v34  ;;  %1521 = vmatprep.subr.mxu1 %v628_v29 }
  0x34   : > { %1537 = vmatpush3.msra.mxu1 %v628_v29 }
  0x35   : > { %1522 = vmatprep.subr.mxu1 %v627_v31 }
  0x36   : > { %1408 = vmatmul.mubr.msk.f32.gmra.mxu0 %vm268_vm1, %v247_v35  ;;  %1538 = vmatpush3.msra.mxu1 %v627_v31 }
  0x37   : > { %1410 = vmatprep.mubr.msk.f32.mxu0 %vm268_vm1, %v248_v36  ;;  %1523 = vmatprep.subr.mxu1 %v626_v48 }
  0x38   : > { %1539 = vmatpush3.msra.mxu1 %v626_v48 }
  0x3a   : > { %1411 = vmatmul.mubr.msk.f32.gmra.mxu0 %vm268_vm1, %v249_v37 }
  0x3b   : > { %1413 = vmatprep.mubr.msk.f32.mxu0 %vm268_vm1, %v250_v38 }
  0x3e   : > { %1414 = vmatmul.mubr.msk.f32.gmra.mxu0 %vm268_vm1, %v251_v39 }
  0x3f   : > { %1416 = vmatprep.mubr.msk.f32.mxu0 %vm268_vm1, %v252_v40 }
  0x42   : > { %1417 = vmatmul.mubr.msk.f32.gmra.mxu0 %vm268_vm1, %v253_v41 }
  0x43   : > { %1419 = vmatprep.mubr.msk.f32.mxu0 %vm268_vm1, %v254_v42 }
  0x46   : > { %1420 = vmatmul.mubr.msk.f32.gmra.mxu0 %vm268_vm1, %v255_v43 }
  0x47   : > { %1422 = vmatprep.mubr.msk.f32.mxu0 %vm268_vm1, %v256_v44 }
  0x4a   : > { %1423 = vmatmul.mubr.msk.f32.gmra.mxu0 %vm268_vm1, %v257_v45 }
  0x4b   : > { %1425 = vmatprep.mubr.msk.f32.mxu0 %vm268_vm1, %v258_v46 }
  0x4e   : > { %1426 = vmatmul.mubr.msk.f32.gmra.mxu0 %vm268_vm1, %v259_v47 }
  0xd0   : > { %v1382_v50 = vpop.f32.mrf.mxu0 }
  0xd1   : > { %v441_v51 = vadd.f32 %v1382_v50, %v1850_v49 }
  0xd2   : > { %v435_v52 = vpop.f32.mrf.mxu0 }
  0xd3   : > { %v436_v53 = vadd.f32 %v1850_v49, %v435_v52  ;;  %v595_v56 = vmax.f32 %v441_v51, 0.0 }
  0xd5   : > { %v1385_v54 = vpop.f32.mrf.mxu0  ;;  %v594_v55 = vmax.f32 %v436_v53, 0.0 }
  0xd6   : > { %v451_v57 = vadd.f32 %v1385_v54, %v1850_v49 }
  0xd7   : > { %v445_v58 = vpop.f32.mrf.mxu0  ;;  %1460 = vmatprep.mubr.f32.mxu0 %v594_v55 }
  0xd8   : > { %v446_v59 = vadd.f32 %v1850_v49, %v445_v58  ;;  %1461 = vmatmul.mubr.f32.vlgmr.msra.gmra.mxu0 %v595_v56  ;;  %v597_v63 = vmax.f32 %v451_v57, 0.0 }
  0xda   : > { %v1388_v60 = vpop.f32.mrf.mxu0  ;;  %v596_v61 = vmax.f32 %v446_v59, 0.0 }
  0xdb   : > { %v461_v62 = vadd.f32 %v1388_v60, %v1850_v49 }
  0xdc   : > { %v455_v0 = vpop.f32.mrf.mxu0  ;;  %1463 = vmatprep.mubr.f32.mxu0 %v596_v61 }
  0xdd   : > { %v456_v1 = vadd.f32 %v1850_v49, %v455_v0  ;;  %v599_v2 = vmax.f32 %v461_v62, 0.0  ;;  %1464 = vmatmul.mubr.f32.gmra.mxu0 %v597_v63 }
  0xde   : > { %v1391_v3 = vpop.f32.mrf.mxu0 }
  0xdf   : > { %v598_v4 = vmax.f32 %v456_v1, 0.0  ;;  %v471_v5 = vadd.f32 %v1391_v3, %v1850_v49 }
  0xe0   : > { %v465_v6 = vpop.f32.mrf.mxu0 }
  0xe1   : > { %1466 = vmatprep.mubr.f32.mxu0 %v598_v4  ;;  %v466_v7 = vadd.f32 %v1850_v49, %v465_v6  ;;  %v601_v8 = vmax.f32 %v471_v5, 0.0 }
  0xe2   : > { %v1394_v9 = vpop.f32.mrf.mxu0  ;;  %1467 = vmatmul.mubr.f32.gmra.mxu0 %v599_v2 }
  0xe3   : > { %v481_v10 = vadd.f32 %v1394_v9, %v1850_v49  ;;  %v600_v11 = vmax.f32 %v466_v7, 0.0 }
  0xe4   : > { %v475_v12 = vpop.f32.mrf.mxu0 }
  0xe5   : > { %v476_v13 = vadd.f32 %v1850_v49, %v475_v12  ;;  %1469 = vmatprep.mubr.f32.mxu1 %v600_v11  ;;  %v603_v14 = vmax.f32 %v481_v10, 0.0 }
  0xe6   : > { %v1397_v15 = vpop.f32.mrf.mxu0  ;;  %1470 = vmatmul.mubr.f32.vlgmr.msra.gmra.mxu1 %v601_v8 }
  0xe7   : > { %v602_v16 = vmax.f32 %v476_v13, 0.0  ;;  %v491_v17 = vadd.f32 %v1397_v15, %v1850_v49 }
  0xe8   : > { %v485_v18 = vpop.f32.mrf.mxu0 }
  0xe9   : > { %v486_v19 = vadd.f32 %v1850_v49, %v485_v18  ;;  %1472 = vmatprep.mubr.f32.mxu1 %v602_v16  ;;  %v605_v20 = vmax.f32 %v491_v17, 0.0 }
  0xea   : > { %v1400_v21 = vpop.f32.mrf.mxu0  ;;  %1473 = vmatmul.mubr.f32.gmra.mxu1 %v603_v14 }
  0xeb   : > { %v604_v22 = vmax.f32 %v486_v19, 0.0  ;;  %v501_v23 = vadd.f32 %v1400_v21, %v1850_v49  ;;  %v1887_v19 = vld [vmem:[%s2255_s4] ss:$0 sm:$0xff] }
  0xec   : > { %v495_v24 = vpop.f32.mrf.mxu0 }
  0xed   : > { %v496_v25 = vadd.f32 %v1850_v49, %v495_v24  ;;  %1475 = vmatprep.mubr.f32.mxu1 %v604_v22  ;;  %v607_v26 = vmax.f32 %v501_v23, 0.0 }
  0xee   : > { %v1403_v27 = vpop.f32.mrf.mxu0  ;;  %1476 = vmatmul.mubr.f32.gmra.mxu1 %v605_v20 }
  0xef   : > { %v606_v28 = vmax.f32 %v496_v25, 0.0  ;;  %v511_v29 = vadd.f32 %v1403_v27, %v1850_v49 }
  0xf0   : > { %v505_v30 = vpop.f32.mrf.mxu0 }
  0xf1   : > { %v506_v31 = vadd.f32 %v1850_v49, %v505_v30  ;;  %1478 = vmatprep.mubr.f32.mxu1 %v606_v28  ;;  %v609_v32 = vmax.f32 %v511_v29, 0.0 }
  0xf2   : > { %v1406_v33 = vpop.f32.mrf.mxu0  ;;  %1479 = vmatmul.mubr.f32.gmra.mxu1 %v607_v26 }
  0xf3   : > { %v608_v34 = vmax.f32 %v506_v31, 0.0  ;;  %v521_v35 = vadd.f32 %v1406_v33, %v1850_v49 }
  0xf4   : > { %v515_v36 = vpop.f32.mrf.mxu0 }
  0xf5   : > { %v516_v37 = vadd.f32 %v1850_v49, %v515_v36  ;;  %1481 = vmatprep.mubr.f32.mxu1 %v608_v34  ;;  %v611_v38 = vmax.f32 %v521_v35, 0.0 }
  0xf6   : > { %v1409_v39 = vpop.f32.mrf.mxu0  ;;  %1482 = vmatmul.mubr.f32.gmra.mxu1 %v609_v32 }
  0xf7   : > { %v610_v40 = vmax.f32 %v516_v37, 0.0  ;;  %v531_v41 = vadd.f32 %v1409_v39, %v1850_v49 }
  0xf8   : > { %v525_v42 = vpop.f32.mrf.mxu0 }
  0xf9   : > { %v526_v43 = vadd.f32 %v1850_v49, %v525_v42  ;;  %1484 = vmatprep.mubr.f32.mxu1 %v610_v40  ;;  %v613_v44 = vmax.f32 %v531_v41, 0.0 }
  0xfa   : > { %v1412_v45 = vpop.f32.mrf.mxu0  ;;  %1485 = vmatmul.mubr.f32.gmra.mxu1 %v611_v38 }
  0xfb   : > { %v612_v46 = vmax.f32 %v526_v43, 0.0  ;;  %v541_v47 = vadd.f32 %v1412_v45, %v1850_v49 }
  0xfc   : > { %v535_v48 = vpop.f32.mrf.mxu0 }
  0xfd   : > { %v536_v50 = vadd.f32 %v1850_v49, %v535_v48  ;;  %1487 = vmatprep.mubr.f32.mxu1 %v612_v46  ;;  %v615_v51 = vmax.f32 %v541_v47, 0.0 }
  0xfe   : > { %v1415_v52 = vpop.f32.mrf.mxu0  ;;  %1488 = vmatmul.mubr.f32.gmra.mxu1 %v613_v44 }
  0xff   : > { %v614_v53 = vmax.f32 %v536_v50, 0.0  ;;  %v551_v54 = vadd.f32 %v1415_v52, %v1850_v49 }
 0x100   : > { %v545_v55 = vpop.f32.mrf.mxu0 }
 0x101   : > { %v546_v56 = vadd.f32 %v1850_v49, %v545_v55  ;;  %1490 = vmatprep.mubr.f32.mxu1 %v614_v53  ;;  %v617_v57 = vmax.f32 %v551_v54, 0.0 }
 0x102   : > { %v1418_v58 = vpop.f32.mrf.mxu0  ;;  %1491 = vmatmul.mubr.f32.gmra.mxu1 %v615_v51 }
 0x103   : > { %v616_v59 = vmax.f32 %v546_v56, 0.0  ;;  %v561_v60 = vadd.f32 %v1418_v58, %v1850_v49 }
 0x104   : > { %v555_v61 = vpop.f32.mrf.mxu0 }
 0x105   : > { %v556_v62 = vadd.f32 %v1850_v49, %v555_v61  ;;  %1493 = vmatprep.mubr.f32.mxu1 %v616_v59  ;;  %v619_v63 = vmax.f32 %v561_v60, 0.0 }
 0x106   : > { %v1421_v0 = vpop.f32.mrf.mxu0  ;;  %1494 = vmatmul.mubr.f32.gmra.mxu1 %v617_v57 }
 0x107   : > { %v618_v1 = vmax.f32 %v556_v62, 0.0  ;;  %v571_v2 = vadd.f32 %v1421_v0, %v1850_v49 }
 0x108   : > { %v565_v3 = vpop.f32.mrf.mxu0 }
 0x109   : > { %v566_v4 = vadd.f32 %v1850_v49, %v565_v3  ;;  %1496 = vmatprep.mubr.f32.mxu1 %v618_v1  ;;  %v621_v5 = vmax.f32 %v571_v2, 0.0 }
 0x10a   : > { %v1424_v6 = vpop.f32.mrf.mxu0  ;;  %1497 = vmatmul.mubr.f32.gmra.mxu1 %v619_v63 }
 0x10b   : > { %v620_v7 = vmax.f32 %v566_v4, 0.0  ;;  %v581_v8 = vadd.f32 %v1424_v6, %v1850_v49 }
 0x10c   : > { %v575_v9 = vpop.f32.mrf.mxu0 }
 0x10d   : > { %v576_v10 = vadd.f32 %v1850_v49, %v575_v9  ;;  %1499 = vmatprep.mubr.f32.mxu1 %v620_v7  ;;  %v623_v11 = vmax.f32 %v581_v8, 0.0 }
 0x10e   : > { %v1427_v12 = vpop.f32.mrf.mxu0  ;;  %1500 = vmatmul.mubr.f32.gmra.mxu1 %v621_v5 }
 0x10f   : > { %v622_v13 = vmax.f32 %v576_v10, 0.0  ;;  %v591_v14 = vadd.f32 %v1427_v12, %v1850_v49 }
 0x110   : > { %v585_v15 = vpop.f32.mrf.mxu0 }
 0x111   : > { %v586_v16 = vadd.f32 %v1850_v49, %v585_v15  ;;  %1502 = vmatprep.mubr.f32.mxu1 %v622_v13  ;;  %v625_v17 = vmax.f32 %v591_v14, 0.0 }
 0x112   : > { %1503 = vmatmul.mubr.f32.gmra.mxu1 %v623_v11 }
 0x113   : > { %v624_v18 = vmax.f32 %v586_v16, 0.0 }
 0x115   : > { %1505 = vmatprep.mubr.f32.mxu1 %v624_v18 }
 0x116   : > { %1506 = vmatmul.mubr.f32.gmra.mxu1 %v625_v17 }
 0x198   : > { %v1462_v20 = vpop.f32.mrf.mxu0 }
 0x199   : > { %v1890_v21 = vadd.f32 %v1462_v20, %v1887_v19 }
 0x19a   : > { %v715_v22 = vpop.f32.mrf.mxu0 }
 0x19b   : > { %876 = vmax.xlane.f32.xlu0 %v1890_v21  ;;  %v1894_v49 = vadd.f32 %v1887_v19, %v715_v22 }
 0x19d   : > { %v1465_v23 = vpop.f32.mrf.mxu0 }
 0x19e   : > { %v1897_v24 = vadd.f32 %v1465_v23, %v1887_v19 }
 0x19f   : > { %v725_v25 = vpop.f32.mrf.mxu0  ;;  %874 = vmax.xlane.f32.xlu0 %v1894_v49 }
 0x1a0   : > { %880 = vmax.xlane.f32.xlu1 %v1897_v24  ;;  %v1902_v27 = vadd.f32 %v1887_v19, %v725_v25 }
 0x1a2   : > { %v1468_v26 = vpop.f32.mrf.mxu0 }
 0x1a3   : > { %v1909_v31 = vadd.f32 %v1468_v26, %v1887_v19 }
 0x1a4   : > { %v735_v28 = vpop.f32.mrf.mxu0  ;;  %878 = vmax.xlane.f32.xlu1 %v1902_v27 }
 0x1a5   : > { %v1905_v29 = vadd.f32 %v1887_v19, %v735_v28 }
 0x1a6   : > { %v1471_v30 = vpop.f32.mrf.mxu1 }
 0x1a7   : > { %882 = vmax.xlane.f32.xlu0 %v1905_v29  ;;  %v1917_v35 = vadd.f32 %v1471_v30, %v1887_v19 }
 0x1a8   : > { %v745_v32 = vpop.f32.mrf.mxu1  ;;  %884 = vmax.xlane.f32.xlu1 %v1909_v31 }
 0x1a9   : > { %v1913_v33 = vadd.f32 %v1887_v19, %v745_v32 }
 0x1aa   : > { %v1474_v34 = vpop.f32.mrf.mxu1 }
 0x1ab   : > { %886 = vmax.xlane.f32.xlu0 %v1913_v33  ;;  %v1925_v39 = vadd.f32 %v1474_v34, %v1887_v19 }
 0x1ac   : > { %v755_v36 = vpop.f32.mrf.mxu1  ;;  %888 = vmax.xlane.f32.xlu1 %v1917_v35 }
 0x1ad   : > { %v1921_v37 = vadd.f32 %v1887_v19, %v755_v36 }
 0x1ae   : > { %v1477_v38 = vpop.f32.mrf.mxu1 }
 0x1af   : > { %890 = vmax.xlane.f32.xlu0 %v1921_v37  ;;  %v1933_v43 = vadd.f32 %v1477_v38, %v1887_v19 }
 0x1b0   : > { %v765_v40 = vpop.f32.mrf.mxu1  ;;  %892 = vmax.xlane.f32.xlu1 %v1925_v39 }
 0x1b1   : > { %v1929_v41 = vadd.f32 %v1887_v19, %v765_v40 }
 0x1b2   : > { %v1480_v42 = vpop.f32.mrf.mxu1 }
 0x1b3   : > { %894 = vmax.xlane.f32.xlu0 %v1929_v41  ;;  %v1941_v47 = vadd.f32 %v1480_v42, %v1887_v19 }
 0x1b4   : > { %v775_v44 = vpop.f32.mrf.mxu1  ;;  %896 = vmax.xlane.f32.xlu1 %v1933_v43 }
 0x1b5   : > { %v1937_v45 = vadd.f32 %v1887_v19, %v775_v44 }
 0x1b6   : > { %v1483_v46 = vpop.f32.mrf.mxu1 }
 0x1b7   : > { %898 = vmax.xlane.f32.xlu0 %v1937_v45  ;;  %v1949_v52 = vadd.f32 %v1483_v46, %v1887_v19 }
 0x1b8   : > { %v785_v48 = vpop.f32.mrf.mxu1  ;;  %900 = vmax.xlane.f32.xlu1 %v1941_v47 }
 0x1b9   : > { %v1945_v50 = vadd.f32 %v1887_v19, %v785_v48 }
 0x1ba   : > { %v1486_v51 = vpop.f32.mrf.mxu1 }
 0x1bb   : > { %902 = vmax.xlane.f32.xlu0 %v1945_v50  ;;  %v1957_v56 = vadd.f32 %v1486_v51, %v1887_v19 }
 0x1bc   : > { %v795_v53 = vpop.f32.mrf.mxu1  ;;  %904 = vmax.xlane.f32.xlu1 %v1949_v52 }
 0x1bd   : > { %v1953_v54 = vadd.f32 %v1887_v19, %v795_v53 }
 0x1be   : > { %v1489_v55 = vpop.f32.mrf.mxu1 }
 0x1bf   : > { %906 = vmax.xlane.f32.xlu0 %v1953_v54  ;;  %v1965_v60 = vadd.f32 %v1489_v55, %v1887_v19 }
 0x1c0   : > { %v805_v57 = vpop.f32.mrf.mxu1  ;;  %908 = vmax.xlane.f32.xlu1 %v1957_v56 }
 0x1c1   : > { %v1961_v58 = vadd.f32 %v1887_v19, %v805_v57 }
 0x1c2   : > { %v1492_v59 = vpop.f32.mrf.mxu1 }
 0x1c3   : > { %910 = vmax.xlane.f32.xlu0 %v1961_v58  ;;  %v1973_v0 = vadd.f32 %v1492_v59, %v1887_v19 }
 0x1c4   : > { %v815_v61 = vpop.f32.mrf.mxu1  ;;  %912 = vmax.xlane.f32.xlu1 %v1965_v60 }
 0x1c5   : > { %v1969_v62 = vadd.f32 %v1887_v19, %v815_v61 }
 0x1c6   : > { %v1495_v63 = vpop.f32.mrf.mxu1 }
 0x1c7   : > { %914 = vmax.xlane.f32.xlu0 %v1969_v62  ;;  %v1981_v4 = vadd.f32 %v1495_v63, %v1887_v19 }
 0x1c8   : > { %v825_v1 = vpop.f32.mrf.mxu1  ;;  %916 = vmax.xlane.f32.xlu1 %v1973_v0 }
 0x1c9   : > { %v1977_v2 = vadd.f32 %v1887_v19, %v825_v1 }
 0x1ca   : > { %v1498_v3 = vpop.f32.mrf.mxu1 }
 0x1cb   : > { %918 = vmax.xlane.f32.xlu0 %v1977_v2  ;;  %v1989_v8 = vadd.f32 %v1498_v3, %v1887_v19 }
 0x1cc   : > { %v835_v5 = vpop.f32.mrf.mxu1  ;;  %920 = vmax.xlane.f32.xlu1 %v1981_v4 }
 0x1cd   : > { %v1985_v6 = vadd.f32 %v1887_v19, %v835_v5 }
 0x1ce   : > { %v1501_v7 = vpop.f32.mrf.mxu1 }
 0x1cf   : > { %922 = vmax.xlane.f32.xlu0 %v1985_v6  ;;  %v1997_v12 = vadd.f32 %v1501_v7, %v1887_v19 }
 0x1d0   : > { %v845_v9 = vpop.f32.mrf.mxu1  ;;  %924 = vmax.xlane.f32.xlu1 %v1989_v8 }
 0x1d1   : > { %v1993_v10 = vadd.f32 %v1887_v19, %v845_v9 }
 0x1d2   : > { %v1504_v11 = vpop.f32.mrf.mxu1 }
 0x1d3   : > { %926 = vmax.xlane.f32.xlu0 %v1993_v10  ;;  %v2005_v16 = vadd.f32 %v1504_v11, %v1887_v19 }
 0x1d4   : > { %v855_v13 = vpop.f32.mrf.mxu1  ;;  %928 = vmax.xlane.f32.xlu1 %v1997_v12 }
 0x1d5   : > { %v2001_v14 = vadd.f32 %v1887_v19, %v855_v13 }
 0x1d6   : > { %v1507_v15 = vpop.f32.mrf.mxu1 }
 0x1d7   : > { %930 = vmax.xlane.f32.xlu0 %v2001_v14  ;;  %v2013_v20 = vadd.f32 %v1507_v15, %v1887_v19 }
 0x1d8   : > { %v865_v17 = vpop.f32.mrf.mxu1  ;;  %932 = vmax.xlane.f32.xlu1 %v2005_v16 }
 0x1d9   : > { %v2009_v18 = vadd.f32 %v1887_v19, %v865_v17 }
 0x1db   : > { %934 = vmax.xlane.f32.xlu0 %v2009_v18 }
 0x1dc   : > { %936 = vmax.xlane.f32.xlu1 %v2013_v20 }
 0x224   : > { %v877_v22 = vpop.xlane.xlu0 %876 }
 0x225   : > { %v939_v23 = vsub.f32 %v1890_v21, %v877_v22 }
 0x227   : > { %v972_v25 = vmul.f32 1.442695, %v939_v23 }
 0x228   : > { %v875_v28 = vpop.xlane.xlu0 %874 }
 0x229   : > { %v881_v26 = vpop.xlane.xlu1 %880  ;;  %1548 = vpow2.f32 %v972_v25  ;;  %v938_v32 = vsub.f32 %v1894_v49, %v875_v28 }
 0x22a   : > { %v941_v30 = vsub.f32 %v1897_v24, %v881_v26 }
 0x22b   : > { %v970_v36 = vmul.f32 1.442695, %v938_v32 }
 0x22c   : > { %v976_v34 = vmul.f32 1.442695, %v941_v30 }
 0x22d   : > { %v879_v38 = vpop.xlane.xlu1 %878 }
 0x22e   : > { %1550 = vpow2.f32 %v976_v34  ;;  %v940_v19 = vsub.f32 %v1902_v27, %v879_v38 }
 0x22f   : > { %1552 = vpow2.f32 %v970_v36 }
 0x230   : > { %v883_v40 = vpop.xlane.xlu0 %882  ;;  %v974_v42 = vmul.f32 1.442695, %v940_v19 }
 0x231   : > { %v942_v44 = vsub.f32 %v1905_v29, %v883_v40  ;;  %v885_v21 = vpop.xlane.xlu1 %884 }
 0x232   : > { %1554 = vpow2.f32 %v974_v42  ;;  %v943_v46 = vsub.f32 %v1909_v31, %v885_v21 }
 0x233   : > { %v978_v48 = vmul.f32 1.442695, %v942_v44 }
 0x234   : > { %v887_v51 = vpop.xlane.xlu0 %886  ;;  %v980_v24 = vmul.f32 1.442695, %v943_v46 }
 0x235   : > { %v944_v49 = vsub.f32 %v1913_v33, %v887_v51  ;;  %v889_v53 = vpop.xlane.xlu1 %888 }
 0x236   : > { %1556 = vpow2.f32 %v980_v24  ;;  %v945_v55 = vsub.f32 %v1917_v35, %v889_v53  ;;  %v2025_v57 = vpop.eup %1548 }
 0x237   : > { %1558 = vpow2.f32 %v978_v48  ;;  %v982_v27 = vmul.f32 1.442695, %v944_v49  ;;  %1036 = vadd.xlane.f32.xlu1 %v2025_v57 }
 0x238   : > { %v891_v59 = vpop.xlane.xlu0 %890  ;;  %v984_v61 = vmul.f32 1.442695, %v945_v55 }
 0x239   : > { %v946_v29 = vsub.f32 %v1921_v37, %v891_v59  ;;  %v893_v31 = vpop.xlane.xlu1 %892 }
 0x23a   : > { %1560 = vpow2.f32 %v984_v61  ;;  %v947_v63 = vsub.f32 %v1925_v39, %v893_v31 }
 0x23b   : > { %v2030_v1 = vpop.eup %1550  ;;  %1562 = vpow2.f32 %v982_v27  ;;  %v986_v33 = vmul.f32 1.442695, %v946_v29 }
 0x23c   : > { %v895_v3 = vpop.xlane.xlu0 %894  ;;  %v2032_v35 = vpop.eup %1552  ;;  %v988_v5 = vmul.f32 1.442695, %v947_v63  ;;  %1040 = vadd.xlane.f32.xlu1 %v2030_v1 }
 0x23d   : > { %v948_v7 = vsub.f32 %v1929_v41, %v895_v3  ;;  %1034 = vadd.xlane.f32.xlu0 %v2032_v35  ;;  %v897_v37 = vpop.xlane.xlu1 %896 }
 0x23e   : > { %1564 = vpow2.f32 %v988_v5  ;;  %v949_v9 = vsub.f32 %v1933_v43, %v897_v37 }
 0x23f   : > { %v2038_v11 = vpop.eup %1554  ;;  %1566 = vpow2.f32 %v986_v33  ;;  %v990_v39 = vmul.f32 1.442695, %v948_v7 }
 0x240   : > { %v899_v13 = vpop.xlane.xlu0 %898  ;;  %v992_v15 = vmul.f32 1.442695, %v949_v9 }
 0x241   : > { %v950_v17 = vsub.f32 %v1937_v45, %v899_v13  ;;  %1038 = vadd.xlane.f32.xlu0 %v2038_v11  ;;  %v901_v22 = vpop.xlane.xlu1 %900 }
 0x242   : > { %1568 = vpow2.f32 %v992_v15  ;;  %v951_v41 = vsub.f32 %v1941_v47, %v901_v22 }
 0x243   : > { %v2043_v23 = vpop.eup %1556  ;;  %1570 = vpow2.f32 %v990_v39  ;;  %v994_v25 = vmul.f32 1.442695, %v950_v17 }
 0x244   : > { %v903_v26 = vpop.xlane.xlu0 %902  ;;  %v2045_v43 = vpop.eup %1558  ;;  %v996_v28 = vmul.f32 1.442695, %v951_v41  ;;  %1044 = vadd.xlane.f32.xlu1 %v2043_v23 }
 0x245   : > { %v952_v30 = vsub.f32 %v1945_v50, %v903_v26  ;;  %1042 = vadd.xlane.f32.xlu0 %v2045_v43  ;;  %v905_v45 = vpop.xlane.xlu1 %904 }
 0x246   : > { %1572 = vpow2.f32 %v996_v28  ;;  %v953_v32 = vsub.f32 %v1949_v52, %v905_v45 }
 0x247   : > { %v2051_v34 = vpop.eup %1560  ;;  %1574 = vpow2.f32 %v994_v25  ;;  %v998_v47 = vmul.f32 1.442695, %v952_v30 }
 0x248   : > { %v907_v36 = vpop.xlane.xlu0 %906  ;;  %v2053_v38 = vpop.eup %1562  ;;  %v1000_v19 = vmul.f32 1.442695, %v953_v32  ;;  %1048 = vadd.xlane.f32.xlu1 %v2051_v34 }
 0x249   : > { %v954_v40 = vsub.f32 %v1953_v54, %v907_v36  ;;  %1046 = vadd.xlane.f32.xlu0 %v2053_v38  ;;  %v909_v50 = vpop.xlane.xlu1 %908 }
 0x24a   : > { %1576 = vpow2.f32 %v1000_v19  ;;  %v955_v42 = vsub.f32 %v1957_v56, %v909_v50 }
 0x24b   : > { %v2059_v44 = vpop.eup %1564  ;;  %1578 = vpow2.f32 %v998_v47  ;;  %v1002_v52 = vmul.f32 1.442695, %v954_v40 }
 0x24c   : > { %v911_v21 = vpop.xlane.xlu0 %910  ;;  %v2061_v46 = vpop.eup %1566  ;;  %v1004_v48 = vmul.f32 1.442695, %v955_v42  ;;  %1052 = vadd.xlane.f32.xlu1 %v2059_v44 }
 0x24d   : > { %v956_v51 = vsub.f32 %v1961_v58, %v911_v21  ;;  %1050 = vadd.xlane.f32.xlu0 %v2061_v46  ;;  %v913_v54 = vpop.xlane.xlu1 %912 }
 0x24e   : > { %1580 = vpow2.f32 %v1004_v48  ;;  %v957_v24 = vsub.f32 %v1965_v60, %v913_v54 }
 0x24f   : > { %v2067_v49 = vpop.eup %1568  ;;  %1582 = vpow2.f32 %v1002_v52  ;;  %v1006_v56 = vmul.f32 1.442695, %v956_v51 }
 0x250   : > { %v915_v53 = vpop.xlane.xlu0 %914  ;;  %v2069_v55 = vpop.eup %1570  ;;  %v1008_v27 = vmul.f32 1.442695, %v957_v24  ;;  %1056 = vadd.xlane.f32.xlu1 %v2067_v49 }
 0x251   : > { %v958_v59 = vsub.f32 %v1969_v62, %v915_v53  ;;  %1054 = vadd.xlane.f32.xlu0 %v2069_v55  ;;  %v917_v58 = vpop.xlane.xlu1 %916 }
 0x252   : > { %1584 = vpow2.f32 %v1008_v27  ;;  %v959_v61 = vsub.f32 %v1973_v0, %v917_v58 }
 0x253   : > { %v2075_v29 = vpop.eup %1572  ;;  %1586 = vpow2.f32 %v1006_v56  ;;  %v1010_v60 = vmul.f32 1.442695, %v958_v59 }
 0x254   : > { %v919_v31 = vpop.xlane.xlu0 %918  ;;  %v2077_v63 = vpop.eup %1574  ;;  %v1012_v33 = vmul.f32 1.442695, %v959_v61  ;;  %1060 = vadd.xlane.f32.xlu1 %v2075_v29 }
 0x255   : > { %v960_v3 = vsub.f32 %v1977_v2, %v919_v31  ;;  %1058 = vadd.xlane.f32.xlu0 %v2077_v63  ;;  %v921_v62 = vpop.xlane.xlu1 %920 }
 0x256   : > { %1588 = vpow2.f32 %v1012_v33  ;;  %v961_v5 = vsub.f32 %v1981_v4, %v921_v62 }
 0x257   : > { %v2083_v7 = vpop.eup %1576  ;;  %1590 = vpow2.f32 %v1010_v60  ;;  %v1014_v0 = vmul.f32 1.442695, %v960_v3 }
 0x258   : > { %v923_v37 = vpop.xlane.xlu0 %922  ;;  %v2085_v9 = vpop.eup %1578  ;;  %v1016_v39 = vmul.f32 1.442695, %v961_v5  ;;  %1064 = vadd.xlane.f32.xlu1 %v2083_v7 }
 0x259   : > { %v962_v13 = vsub.f32 %v1985_v6, %v923_v37  ;;  %1062 = vadd.xlane.f32.xlu0 %v2085_v9  ;;  %v925_v2 = vpop.xlane.xlu1 %924 }
 0x25a   : > { %1592 = vpow2.f32 %v1016_v39  ;;  %v963_v15 = vsub.f32 %v1989_v8, %v925_v2 }
 0x25b   : > { %v2091_v17 = vpop.eup %1580  ;;  %1594 = vpow2.f32 %v1014_v0  ;;  %v1018_v4 = vmul.f32 1.442695, %v962_v13 }
 0x25c   : > { %v927_v22 = vpop.xlane.xlu0 %926  ;;  %v2093_v41 = vpop.eup %1582  ;;  %v1020_v25 = vmul.f32 1.442695, %v963_v15  ;;  %1068 = vadd.xlane.f32.xlu1 %v2091_v17 }
 0x25d   : > { %v964_v26 = vsub.f32 %v1993_v10, %v927_v22  ;;  %1066 = vadd.xlane.f32.xlu0 %v2093_v41  ;;  %v929_v6 = vpop.xlane.xlu1 %928 }
 0x25e   : > { %1596 = vpow2.f32 %v1020_v25  ;;  %v965_v28 = vsub.f32 %v1997_v12, %v929_v6 }
 0x25f   : > { %v2099_v30 = vpop.eup %1584  ;;  %1598 = vpow2.f32 %v1018_v4  ;;  %v1022_v8 = vmul.f32 1.442695, %v964_v26 }
 0x260   : > { %v931_v45 = vpop.xlane.xlu0 %930  ;;  %v2101_v32 = vpop.eup %1586  ;;  %v1024_v47 = vmul.f32 1.442695, %v965_v28  ;;  %1072 = vadd.xlane.f32.xlu1 %v2099_v30 }
 0x261   : > { %v966_v36 = vsub.f32 %v2001_v14, %v931_v45  ;;  %1070 = vadd.xlane.f32.xlu0 %v2101_v32  ;;  %v933_v10 = vpop.xlane.xlu1 %932 }
 0x262   : > { %1600 = vpow2.f32 %v1024_v47  ;;  %v967_v19 = vsub.f32 %v2005_v16, %v933_v10 }
 0x263   : > { %v2107_v40 = vpop.eup %1588  ;;  %1602 = vpow2.f32 %v1022_v8  ;;  %v1026_v12 = vmul.f32 1.442695, %v966_v36 }
 0x264   : > { %v935_v50 = vpop.xlane.xlu0 %934  ;;  %v2109_v42 = vpop.eup %1590  ;;  %v1028_v52 = vmul.f32 1.442695, %v967_v19  ;;  %1076 = vadd.xlane.f32.xlu1 %v2107_v40 }
 0x265   : > { %v968_v21 = vsub.f32 %v2009_v18, %v935_v50  ;;  %1074 = vadd.xlane.f32.xlu0 %v2109_v42  ;;  %v937_v14 = vpop.xlane.xlu1 %936 }
 0x266   : > { %1604 = vpow2.f32 %v1028_v52  ;;  %v969_v48 = vsub.f32 %v2013_v20, %v937_v14 }
 0x267   : > { %v2115_v51 = vpop.eup %1592  ;;  %1606 = vpow2.f32 %v1026_v12  ;;  %v1030_v16 = vmul.f32 1.442695, %v968_v21 }
 0x268   : > { %v2117_v54 = vpop.eup %1594  ;;  %v1032_v24 = vmul.f32 1.442695, %v969_v48  ;;  %1080 = vadd.xlane.f32.xlu1 %v2115_v51 }
 0x269   : > { %1078 = vadd.xlane.f32.xlu0 %v2117_v54 }
 0x26a   : > { %1608 = vpow2.f32 %v1032_v24 }
 0x26b   : > { %v2121_v18 = vpop.eup %1596  ;;  %1610 = vpow2.f32 %v1030_v16 }
 0x26c   : > { %v2123_v56 = vpop.eup %1598  ;;  %1084 = vadd.xlane.f32.xlu1 %v2121_v18 }
 0x26d   : > { %1082 = vadd.xlane.f32.xlu0 %v2123_v56 }
 0x26f   : > { %v2127_v20 = vpop.eup %1600 }
 0x270   : > { %v2129_v53 = vpop.eup %1602  ;;  %1088 = vadd.xlane.f32.xlu1 %v2127_v20 }
 0x271   : > { %1086 = vadd.xlane.f32.xlu0 %v2129_v53 }
 0x273   : > { %v2133_v27 = vpop.eup %1604 }
 0x274   : > { %v2135_v59 = vpop.eup %1606  ;;  %1092 = vadd.xlane.f32.xlu1 %v2133_v27 }
 0x275   : > { %1090 = vadd.xlane.f32.xlu0 %v2135_v59 }
 0x277   : > { %v2139_v58 = vpop.eup %1608 }
 0x278   : > { %v2141_v61 = vpop.eup %1610  ;;  %1096 = vadd.xlane.f32.xlu1 %v2139_v58 }
 0x279   : > { %1094 = vadd.xlane.f32.xlu0 %v2141_v61 }
 0x2c0   : > { %v1037_v60 = vpop.xlane.xlu1 %1036 }
 0x2c1   : > { %1612 = vrcp.f32 %v1037_v60 }
 0x2c5   : > { %v1041_v31 = vpop.xlane.xlu1 %1040 }
 0x2c6   : > { %1614 = vrcp.f32 %v1041_v31  ;;  %v1035_v33 = vpop.xlane.xlu0 %1034 }
 0x2c7   : > { %1616 = vrcp.f32 %v1035_v33 }
 0x2ca   : > { %v1039_v3 = vpop.xlane.xlu0 %1038 }
 0x2cb   : > { %1618 = vrcp.f32 %v1039_v3 }
 0x2cd   : > { %v1045_v62 = vpop.xlane.xlu1 %1044 }
 0x2ce   : > { %1620 = vrcp.f32 %v1045_v62  ;;  %v1043_v5 = vpop.xlane.xlu0 %1042  ;;  %v1613_v0 = vpop.eup %1612 }
 0x2cf   : > { %1622 = vrcp.f32 %v1043_v5  ;;  %v1101_v37 = vmul.f32 %v1613_v0, %v2025_v57 }
 0x2d1   : > { %v1049_v39 = vpop.xlane.xlu1 %1048  ;;  %1164 = vst.msk [vmem:[%s2150_s19 + $0x8] sm:$0xff] %vm1162_vm2, %v1101_v37 }
 0x2d2   : > { %1624 = vrcp.f32 %v1049_v39  ;;  %v1047_v13 = vpop.xlane.xlu0 %1046 }
 0x2d3   : > { %v1615_v2 = vpop.eup %1614  ;;  %1626 = vrcp.f32 %v1047_v13 }
 0x2d4   : > { %v1617_v15 = vpop.eup %1616  ;;  %v1105_v4 = vmul.f32 %v1615_v2, %v2030_v1 }
 0x2d5   : > { %v1099_v22 = vmul.f32 %v1617_v15, %v2032_v35  ;;  %v1053_v25 = vpop.xlane.xlu1 %1052 }
 0x2d6   : > { %1166 = vst.msk [vmem:[%s2150_s19 + $0x18] sm:$0xff] %vm1162_vm2, %v1105_v4  ;;  %1628 = vrcp.f32 %v1053_v25  ;;  %v1051_v26 = vpop.xlane.xlu0 %1050 }
 0x2d7   : > { %1163 = vst.msk [vmem:[%s2150_s19] sm:$0xff] %vm1162_vm2, %v1099_v22  ;;  %1630 = vrcp.f32 %v1051_v26 }
 0x2d8   : > { %v1619_v57 = vpop.eup %1618 }
 0x2d9   : > { %v1103_v6 = vmul.f32 %v1619_v57, %v2038_v11  ;;  %v1057_v28 = vpop.xlane.xlu1 %1056 }
 0x2da   : > { %1632 = vrcp.f32 %v1057_v28  ;;  %v1055_v8 = vpop.xlane.xlu0 %1054 }
 0x2db   : > { %v1621_v45 = vpop.eup %1620  ;;  %1165 = vst.msk [vmem:[%s2150_s19 + $0x10] sm:$0xff] %vm1162_vm2, %v1103_v6  ;;  %1634 = vrcp.f32 %v1055_v8 }
 0x2dc   : > { %v1623_v1 = vpop.eup %1622  ;;  %v1109_v35 = vmul.f32 %v1621_v45, %v2043_v23 }
 0x2dd   : > { %v1107_v47 = vmul.f32 %v1623_v1, %v2045_v43  ;;  %v1061_v36 = vpop.xlane.xlu1 %1060 }
 0x2de   : > { %1168 = vst.msk [vmem:[%s2150_s19 + $0x28] sm:$0xff] %vm1162_vm2, %v1109_v35  ;;  %1636 = vrcp.f32 %v1061_v36  ;;  %v1059_v10 = vpop.xlane.xlu0 %1058 }
 0x2df   : > { %v1625_v11 = vpop.eup %1624  ;;  %1167 = vst.msk [vmem:[%s2150_s19 + $0x20] sm:$0xff] %vm1162_vm2, %v1107_v47  ;;  %1638 = vrcp.f32 %v1059_v10 }
 0x2e0   : > { %v1627_v19 = vpop.eup %1626  ;;  %v1113_v12 = vmul.f32 %v1625_v11, %v2051_v34 }
 0x2e1   : > { %v1111_v50 = vmul.f32 %v1627_v19, %v2053_v38  ;;  %v1065_v23 = vpop.xlane.xlu1 %1064 }
 0x2e2   : > { %1170 = vst.msk [vmem:[%s2150_s19 + $0x38] sm:$0xff] %vm1162_vm2, %v1113_v12  ;;  %1640 = vrcp.f32 %v1065_v23  ;;  %v1063_v43 = vpop.xlane.xlu0 %1062 }
 0x2e3   : > { %v1629_v52 = vpop.eup %1628  ;;  %1169 = vst.msk [vmem:[%s2150_s19 + $0x30] sm:$0xff] %vm1162_vm2, %v1111_v50  ;;  %1642 = vrcp.f32 %v1063_v43 }
 0x2e4   : > { %v1631_v21 = vpop.eup %1630  ;;  %v1117_v14 = vmul.f32 %v1629_v52, %v2059_v44 }
 0x2e5   : > { %v1115_v48 = vmul.f32 %v1631_v21, %v2061_v46  ;;  %v1069_v34 = vpop.xlane.xlu1 %1068 }
 0x2e6   : > { %1172 = vst.msk [vmem:[%s2150_s19 + $0x48] sm:$0xff] %vm1162_vm2, %v1117_v14  ;;  %1644 = vrcp.f32 %v1069_v34  ;;  %v1067_v38 = vpop.xlane.xlu0 %1066 }
 0x2e7   : > { %v1633_v16 = vpop.eup %1632  ;;  %1171 = vst.msk [vmem:[%s2150_s19 + $0x40] sm:$0xff] %vm1162_vm2, %v1115_v48  ;;  %1646 = vrcp.f32 %v1067_v38 }
 0x2e8   : > { %v1635_v24 = vpop.eup %1634  ;;  %v1121_v60 = vmul.f32 %v1633_v16, %v2067_v49 }
 0x2e9   : > { %v1119_v31 = vmul.f32 %v1635_v24, %v2069_v55  ;;  %v1073_v44 = vpop.xlane.xlu1 %1072 }
 0x2ea   : > { %1174 = vst.msk [vmem:[%s2150_s19 + $0x58] sm:$0xff] %vm1162_vm2, %v1121_v60  ;;  %1648 = vrcp.f32 %v1073_v44  ;;  %v1071_v46 = vpop.xlane.xlu0 %1070 }
 0x2eb   : > { %v1637_v33 = vpop.eup %1636  ;;  %1173 = vst.msk [vmem:[%s2150_s19 + $0x50] sm:$0xff] %vm1162_vm2, %v1119_v31  ;;  %1650 = vrcp.f32 %v1071_v46 }
 0x2ec   : > { %v1639_v3 = vpop.eup %1638  ;;  %v1125_v62 = vmul.f32 %v1637_v33, %v2075_v29 }
 0x2ed   : > { %v1123_v5 = vmul.f32 %v1639_v3, %v2077_v63  ;;  %v1077_v49 = vpop.xlane.xlu1 %1076 }
 0x2ee   : > { %1176 = vst.msk [vmem:[%s2150_s19 + $0x68] sm:$0xff] %vm1162_vm2, %v1125_v62  ;;  %1652 = vrcp.f32 %v1077_v49  ;;  %v1075_v55 = vpop.xlane.xlu0 %1074 }
 0x2ef   : > { %v1641_v0 = vpop.eup %1640  ;;  %1175 = vst.msk [vmem:[%s2150_s19 + $0x60] sm:$0xff] %vm1162_vm2, %v1123_v5  ;;  %1654 = vrcp.f32 %v1075_v55 }
 0x2f0   : > { %v1643_v37 = vpop.eup %1642  ;;  %v1129_v39 = vmul.f32 %v1641_v0, %v2083_v7 }
 0x2f1   : > { %v1127_v13 = vmul.f32 %v1643_v37, %v2085_v9  ;;  %v1081_v29 = vpop.xlane.xlu1 %1080 }
 0x2f2   : > { %1178 = vst.msk [vmem:[%s2150_s19 + $0x78] sm:$0xff] %vm1162_vm2, %v1129_v39  ;;  %1656 = vrcp.f32 %v1081_v29  ;;  %v1079_v63 = vpop.xlane.xlu0 %1078 }
 0x2f3   : > { %v1645_v2 = vpop.eup %1644  ;;  %1177 = vst.msk [vmem:[%s2150_s19 + $0x70] sm:$0xff] %vm1162_vm2, %v1127_v13  ;;  %1658 = vrcp.f32 %v1079_v63 }
 0x2f4   : > { %v1647_v15 = vpop.eup %1646  ;;  %v1133_v4 = vmul.f32 %v1645_v2, %v2091_v17 }
 0x2f5   : > { %v1131_v22 = vmul.f32 %v1647_v15, %v2093_v41  ;;  %v1085_v7 = vpop.xlane.xlu1 %1084 }
 0x2f6   : > { %1180 = vst.msk [vmem:[%s2150_s19 + $0x88] sm:$0xff] %vm1162_vm2, %v1133_v4  ;;  %1660 = vrcp.f32 %v1085_v7  ;;  %v1083_v9 = vpop.xlane.xlu0 %1082 }
 0x2f7   : > { %v1649_v25 = vpop.eup %1648  ;;  %1179 = vst.msk [vmem:[%s2150_s19 + $0x80] sm:$0xff] %vm1162_vm2, %v1131_v22  ;;  %1662 = vrcp.f32 %v1083_v9 }
 0x2f8   : > { %v1651_v26 = vpop.eup %1650  ;;  %v1137_v57 = vmul.f32 %v1649_v25, %v2099_v30 }
 0x2f9   : > { %v1135_v6 = vmul.f32 %v1651_v26, %v2101_v32  ;;  %v1089_v17 = vpop.xlane.xlu1 %1088 }
 0x2fa   : > { %1182 = vst.msk [vmem:[%s2150_s19 + $0x98] sm:$0xff] %vm1162_vm2, %v1137_v57  ;;  %1664 = vrcp.f32 %v1089_v17  ;;  %v1087_v41 = vpop.xlane.xlu0 %1086 }
 0x2fb   : > { %v1653_v28 = vpop.eup %1652  ;;  %1181 = vst.msk [vmem:[%s2150_s19 + $0x90] sm:$0xff] %vm1162_vm2, %v1135_v6  ;;  %1666 = vrcp.f32 %v1087_v41 }
 0x2fc   : > { %v1655_v8 = vpop.eup %1654  ;;  %v1141_v45 = vmul.f32 %v1653_v28, %v2107_v40 }
 0x2fd   : > { %v1139_v1 = vmul.f32 %v1655_v8, %v2109_v42  ;;  %v1093_v30 = vpop.xlane.xlu1 %1092 }
 0x2fe   : > { %1184 = vst.msk [vmem:[%s2150_s19 + $0xa8] sm:$0xff] %vm1162_vm2, %v1141_v45  ;;  %1668 = vrcp.f32 %v1093_v30  ;;  %v1091_v32 = vpop.xlane.xlu0 %1090 }
 0x2ff   : > { %v1657_v35 = vpop.eup %1656  ;;  %1183 = vst.msk [vmem:[%s2150_s19 + $0xa0] sm:$0xff] %vm1162_vm2, %v1139_v1  ;;  %1670 = vrcp.f32 %v1091_v32 }
 0x300   : > { %v1659_v47 = vpop.eup %1658  ;;  %v1145_v36 = vmul.f32 %v1657_v35, %v2115_v51 }
 0x301   : > { %v1143_v10 = vmul.f32 %v1659_v47, %v2117_v54  ;;  %v1097_v40 = vpop.xlane.xlu1 %1096 }
 0x302   : > { %1186 = vst.msk [vmem:[%s2150_s19 + $0xb8] sm:$0xff] %vm1162_vm2, %v1145_v36  ;;  %1672 = vrcp.f32 %v1097_v40  ;;  %v1095_v42 = vpop.xlane.xlu0 %1094 }
 0x303   : > { %v1661_v11 = vpop.eup %1660  ;;  %1185 = vst.msk [vmem:[%s2150_s19 + $0xb0] sm:$0xff] %vm1162_vm2, %v1143_v10  ;;  %1674 = vrcp.f32 %v1095_v42 }
 0x304   : > { %v1663_v19 = vpop.eup %1662  ;;  %v1149_v12 = vmul.f32 %v1661_v11, %v2121_v18 }
 0x305   : > { %v1147_v51 = vmul.f32 %v1663_v19, %v2123_v56 }
 0x306   : > { %1188 = vst.msk [vmem:[%s2150_s19 + $0xc8] sm:$0xff] %vm1162_vm2, %v1149_v12 }
 0x307   : > { %v1665_v54 = vpop.eup %1664  ;;  %1187 = vst.msk [vmem:[%s2150_s19 + $0xc0] sm:$0xff] %vm1162_vm2, %v1147_v51 }
 0x308   : > { %v1667_v50 = vpop.eup %1666  ;;  %v1153_v23 = vmul.f32 %v1665_v54, %v2127_v20 }
 0x309   : > { %v1151_v43 = vmul.f32 %v1667_v50, %v2129_v53 }
 0x30a   : > { %1190 = vst.msk [vmem:[%s2150_s19 + $0xd8] sm:$0xff] %vm1162_vm2, %v1153_v23 }
 0x30b   : > { %v1669_v52 = vpop.eup %1668  ;;  %1189 = vst.msk [vmem:[%s2150_s19 + $0xd0] sm:$0xff] %vm1162_vm2, %v1151_v43 }
 0x30c   : > { %v1671_v18 = vpop.eup %1670  ;;  %v1157_v56 = vmul.f32 %v1669_v52, %v2133_v27 }
 0x30d   : > { %v1155_v21 = vmul.f32 %v1671_v18, %v2135_v59 }
 0x30e   : > { %1192 = vst.msk [vmem:[%s2150_s19 + $0xe8] sm:$0xff] %vm1162_vm2, %v1157_v56 }
 0x30f   : > { %v1673_v14 = vpop.eup %1672  ;;  %1191 = vst.msk [vmem:[%s2150_s19 + $0xe0] sm:$0xff] %vm1162_vm2, %v1155_v21 }
 0x310   : > { %v1675_v48 = vpop.eup %1674  ;;  %v1161_v20 = vmul.f32 %v1673_v14, %v2139_v58 }
 0x311   : > { %v1159_v53 = vmul.f32 %v1675_v48, %v2141_v61 }
 0x312   : > { %1194 = vst.msk [vmem:[%s2150_s19 + $0xf8] sm:$0xff] %vm1162_vm2, %v1161_v20 }
 0x313   : > { %1193 = vst.msk [vmem:[%s2150_s19 + $0xf0] sm:$0xff] %vm1162_vm2, %v1159_v53 }
 0x314 PF: > { %s15_s18 = sadd.s32 1, %s1682_s18  }
 0x315   : > { %p12_p4 = scmp.ge.s32.totalorder %s15_s18, 4  }
 0x317   :  { %14 = sbr.rel (!%p12_p4) target bundleno = 1 (0x1), region = 70 }

</bundles_post_ra>
